<compile_context>
chip_gen: v5e
topology: v5e:2x2
jax: 0.10.0
libtpu: 0.0.40
codegen_flags: <defaults>
</compile_context>

<pallas_src>
import functools

import numpy as np
import jax
import jax.numpy as jnp
from jax.experimental import pallas as pl
from jax.experimental.pallas import tpu as pltpu


def _input_block_kernel(x_ref, w_in_ref, b_in_ref, wd_ref, bd_ref,
                        w1_ref, b1_ref, w_out_ref, b_out_ref,
                        out_ref, *, batch):
    """Whole (T*batch)-row slab per invocation.

    x_ref:     (T*batch, Din)  bf16, rows ordered (t, b) -> t*batch + b
    wd_ref:    (L, 3H, H)      bf16 fused dilated-conv weights (taps k=0,1,2 on K)
    out_ref:   (T*batch, F + nclass) f32 = [feature_part | softmax(clogit) | clogit]
    """
    TB = x_ref.shape[0]
    H = w_in_ref.shape[1]
    num_layers = wd_ref.shape[0]

    # --- MSTCN in_map: Conv1d(in_dim, H, 1) == row-wise matmul (bf16 in, f32 acc) ---
    h = jnp.dot(x_ref[...], w_in_ref[...],
                preferred_element_type=jnp.float32) + b_in_ref[...]

    # Row index r = t*batch + b.  Since every shift is a whole-time-step multiple of
    # `batch`, the edge condition t >= d is exactly r >= d*batch (no cross-batch leak).
    row = jax.lax.broadcasted_iota(jnp.int32, (TB, H), 0)

    bd = bd_ref[...]          # (L, H) f32
    b1 = b1_ref[...]          # (L, H) f32

    # --- L dilated residual layers: Conv1d(H,H,3,dilation=2^i,padding=2^i) -> ReLU ->
    #     Conv1d(H,H,1) -> (dropout = id) -> residual add ---
    for i in range(num_layers):
        d = 2 ** i
        s = d * batch
        # Dilated taps via XLU rolls + edge masks (pltpu.roll follows jnp.roll semantics:
        # out[r] = in[(r - shift) mod TB]).  Wrapped rows are masked to the conv's zero pad.
        tap_m = jnp.where(row >= s,
                          pltpu.roll(h, shift=s % TB, axis=0), 0.0)        # h[t - d]
        tap_p = jnp.where(row < TB - s,
                          pltpu.roll(h, shift=(TB - s) % TB, axis=0), 0.0)  # h[t + d]
        # Fused 3-tap dilated conv: ONE K=3H MXU matmul (1 push/pop vs 3 + 2 VPU adds).
        stacked = jnp.concatenate([tap_m, h, tap_p], axis=-1).astype(jnp.bfloat16)
        acc = jnp.dot(stacked, wd_ref[i],
                      preferred_element_type=jnp.float32) + bd[i:i + 1, :]
        y = jnp.maximum(acc, 0.0)                                           # ReLU (f32 VPU)
        z = jnp.dot(y.astype(jnp.bfloat16), w1_ref[i],
                    preferred_element_type=jnp.float32) + b1[i:i + 1, :]
        h = h + z                                                           # residual

    # --- MSTCN out map: Conv1d(H, f_dim, 1) ---
    out = jnp.dot(h.astype(jnp.bfloat16), w_out_ref[...],
                  preferred_element_type=jnp.float32) + b_out_ref[...]

    # --- process_feature: split class logits, softmax, concat back ---
    f_dim = out.shape[-1]
    nclass = out_ref.shape[-1] - f_dim
    fm = f_dim - nclass
    clogit = out[:, fm:]
    m = jnp.max(clogit, axis=-1, keepdims=True)
    e = jnp.exp(clogit - m)
    prob = e * pl.reciprocal(jnp.sum(e, axis=-1, keepdims=True), approx=True)  # EUP slot

    # Three direct slice stores into the single combined slab (no final concat temp).
    out_ref[:, :fm] = out[:, :fm]
    out_ref[:, fm:f_dim] = prob
    out_ref[:, f_dim:] = clogit


def input_block_frame(frame_feature, params, nclass, frame_pos=None):
    """frame_feature: (T, B, in_dim) float32.  frame_pos is unused by this block
    (matches the PyTorch forward signature).  Returns (feature, clogit):
    feature (T, B, f_dim) = [feat_part | softmax(clogit)], clogit (T, B, nclass)."""
    del frame_pos
    T, B, Din = frame_feature.shape
    H = params["w_in_t"].shape[1]
    F = params["w_out_t"].shape[1]
    L = params["wd_t"].shape[0]
    if F <= nclass:
        raise ValueError(f"f_dim ({F}) must be > nclass ({nclass}) for process_feature")

    # Batch folded into the matmul M dim: (T, B, C) -> (T*B, C) is a free, layout-
    # preserving reshape (no HBM transpose passes).  bf16 operands halve input DMA bytes.
    rows = T * B
    x_flat = frame_feature.reshape(rows, Din).astype(jnp.bfloat16)

    # Fuse the 3 conv taps on the contraction dim: (L, 3, H, H) -> (L, 3H, H); bf16 MXU
    # weights, biases stay f32 (they add into the f32 accumulators).
    wd_fused = params["wd_t"].reshape(L, 3 * H, H).astype(jnp.bfloat16)
    w_in = params["w_in_t"].astype(jnp.bfloat16)
    w1 = params["w1_t"].astype(jnp.bfloat16)
    w_out = params["w_out_t"].astype(jnp.bfloat16)

    # Explicit scoped-VMEM budget: ~10 (rows x 128-lane-padded) f32 slabs + weights with
    # margin, clamped to the cross-chip-safe 32 MiB default ceiling.
    est = rows * 128 * 4 * 10 + (2 << 20)
    vmem_limit = int(min(max(est, 4 << 20), 32 << 20))

    vmem = pltpu.MemorySpace.VMEM
    kernel = functools.partial(_input_block_kernel, batch=B)
    combined = pl.pallas_call(
        kernel,
        out_shape=jax.ShapeDtypeStruct((rows, F + nclass), jnp.float32),
        in_specs=[pl.BlockSpec(memory_space=vmem)] * 9,
        out_specs=pl.BlockSpec(memory_space=vmem),
        compiler_params=pltpu.CompilerParams(vmem_limit_bytes=vmem_limit),
    )(x_flat, w_in, params["b_in"], wd_fused, params["bd"],
      w1, params["b1"], w_out, params["b_out"])

    combined = combined.reshape(T, B, F + nclass)      # free reshape back
    feature = combined[..., :F]                        # [feat_part | softmax(clogit)]
    clogit = combined[..., F:]
    return feature, clogit


def ref_input_block_frame(frame_feature, params, nclass):
    """Pure-JAX reference (same math, channels-last, f32 HIGHEST precision)."""
    P = jax.lax.Precision.HIGHEST

    def shift(a, off):
        if off == 0:
            return a
        T = a.shape[0]
        z = jnp.zeros((abs(off),) + a.shape[1:], a.dtype)
        if off > 0:
            return jnp.concatenate([a[off:], z], 0)
        return jnp.concatenate([z, a[: T + off]], 0)

    x = frame_feature                                       # (T, B, Din)
    h = jnp.einsum("tbi,ih->tbh", x, params["w_in_t"], precision=P) + params["b_in"][0]
    L = params["wd_t"].shape[0]
    for i in range(L):
        d = 2 ** i
        acc = (jnp.einsum("tbh,hg->tbg", shift(h, -d), params["wd_t"][i, 0], precision=P)
               + jnp.einsum("tbh,hg->tbg", h, params["wd_t"][i, 1], precision=P)
               + jnp.einsum("tbh,hg->tbg", shift(h, d), params["wd_t"][i, 2], precision=P)
               + params["bd"][i])
        y = jnp.maximum(acc, 0.0)
        z = jnp.einsum("tbh,hg->tbg", y, params["w1_t"][i], precision=P) + params["b1"][i]
        h = h + z
    out = jnp.einsum("tbh,hf->tbf", h, params["w_out_t"], precision=P) + params["b_out"][0]
    clogit = out[..., -nclass:]
    feat = out[..., :-nclass]
    prob = jax.nn.softmax(clogit, axis=-1)
    return jnp.concatenate([feat, prob], axis=-1), clogit


if __name__ == "__main__":
    # Small shapes implied by the module: in_dim -> hid_dim -> f_dim (f_dim > nclass).
    T, B = 32, 2
    in_dim, hid_dim, f_dim, nclass, f_layers = 20, 32, 24, 8, 3

    key = jax.random.PRNGKey(0)
    ks = jax.random.split(key, 10)
    params = {
        # weights stored pre-transposed as (C_in, C_out) so the kernel does x @ W
        "w_in_t":  0.1 * jax.random.normal(ks[0], (in_dim, hid_dim), jnp.float32),
        "b_in":    0.1 * jax.random.normal(ks[1], (1, hid_dim), jnp.float32),
        "wd_t":    0.1 * jax.random.normal(ks[2], (f_layers, 3, hid_dim, hid_dim), jnp.float32),
        "bd":      0.1 * jax.random.normal(ks[3], (f_layers, hid_dim), jnp.float32),
        "w1_t":    0.1 * jax.random.normal(ks[4], (f_layers, hid_dim, hid_dim), jnp.float32),
        "b1":      0.1 * jax.random.normal(ks[5], (f_layers, hid_dim), jnp.float32),
        "w_out_t": 0.1 * jax.random.normal(ks[6], (hid_dim, f_dim), jnp.float32),
        "b_out":   0.1 * jax.random.normal(ks[7], (1, f_dim), jnp.float32),
    }
    frame_feature = jax.random.normal(ks[8], (T, B, in_dim), jnp.float32)
    frame_pos = jax.random.normal(ks[9], (T, B, hid_dim), jnp.float32)  # unused by block

    feat, clogit = input_block_frame(frame_feature, params, nclass, frame_pos)
    feat = jax.block_until_ready(feat)
    clogit = jax.block_until_ready(clogit)

    ref_feat, ref_clogit = ref_input_block_frame(frame_feature, params, nclass)
    # Tolerance documented deliberately: kernel uses bf16 MXU operands with f32
    # accumulation (and an EUP approx reciprocal in the softmax) vs the f32
    # Precision.HIGHEST reference -> expected relative drift up to ~1-2%.
    np.testing.assert_allclose(np.asarray(feat), np.asarray(ref_feat), rtol=2e-2, atol=2e-2)
    np.testing.assert_allclose(np.asarray(clogit), np.asarray(ref_clogit), rtol=2e-2, atol=2e-2)
    assert feat.shape == (T, B, f_dim) and clogit.shape == (T, B, nclass)

    print("KERNEL_OK")
</pallas_src>

<mosaic_0001>
module attributes {stable_mosaic.version = 11 : i64} {
  func.func @_input_block_kernel(%arg0: memref<64x20xbf16, #tpu.memory_space<vmem>>, %arg1: memref<20x32xbf16, #tpu.memory_space<vmem>>, %arg2: memref<1x32xf32, #tpu.memory_space<vmem>>, %arg3: memref<3x96x32xbf16, #tpu.memory_space<vmem>>, %arg4: memref<3x32xf32, #tpu.memory_space<vmem>>, %arg5: memref<3x32x32xbf16, #tpu.memory_space<vmem>>, %arg6: memref<3x32xf32, #tpu.memory_space<vmem>>, %arg7: memref<32x24xbf16, #tpu.memory_space<vmem>>, %arg8: memref<1x24xf32, #tpu.memory_space<vmem>>, %arg9: memref<64x32xf32, #tpu.memory_space<vmem>>) attributes {dimension_semantics = [], scalar_prefetch = 0 : i64, scratch_operands = 0 : i64, tpu.core_type = #tpu.core_type<tc>} {
    %c0 = arith.constant 0 : index
    %c0_0 = arith.constant 0 : index
    %0 = vector.load %arg0[%c0, %c0_0] : memref<64x20xbf16, #tpu.memory_space<vmem>>, vector<64x20xbf16>
    %c0_1 = arith.constant 0 : index
    %c0_2 = arith.constant 0 : index
    %1 = vector.load %arg1[%c0_1, %c0_2] : memref<20x32xbf16, #tpu.memory_space<vmem>>, vector<20x32xbf16>
    %cst = arith.constant dense<0.000000e+00> : vector<64x32xf32>
    %2 = tpu.matmul %0, %1, %cst {dimension_numbers = #tpu.dot_dimension_numbers<[1], [0], [0], [1], [0, 0, 1, 1], [], []>} : vector<64x20xbf16>, vector<20x32xbf16>, vector<64x32xf32> -> vector<64x32xf32>
    %c0_3 = arith.constant 0 : index
    %c0_4 = arith.constant 0 : index
    %3 = vector.load %arg2[%c0_3, %c0_4] : memref<1x32xf32, #tpu.memory_space<vmem>>, vector<1x32xf32>
    %4 = vector.broadcast %3 : vector<1x32xf32> to vector<64x32xf32>
    %5 = arith.addf %2, %4 : vector<64x32xf32>
    %6 = tpu.iota {dimensions = array<i32: 0>} : vector<64x32xi32>
    %c0_5 = arith.constant 0 : index
    %c0_6 = arith.constant 0 : index
    %7 = vector.load %arg4[%c0_5, %c0_6] : memref<3x32xf32, #tpu.memory_space<vmem>>, vector<3x32xf32>
    %c0_7 = arith.constant 0 : index
    %c0_8 = arith.constant 0 : index
    %8 = vector.load %arg6[%c0_7, %c0_8] : memref<3x32xf32, #tpu.memory_space<vmem>>, vector<3x32xf32>
    %c2_i32 = arith.constant 2 : i32
    %9 = vector.broadcast %c2_i32 : i32 to vector<64x32xi32>
    %10 = arith.cmpi sge, %6, %9 : vector<64x32xi32>
    %c2_i32_9 = arith.constant 2 : i32
    %11 = tpu.dynamic_rotate %5 by %c2_i32_9 dim 0 : vector<64x32xf32>, i32 -> vector<64x32xf32>
    %cst_10 = arith.constant 0.000000e+00 : f32
    %12 = vector.broadcast %cst_10 : f32 to vector<64x32xf32>
    %13 = arith.select %10, %11, %12 : vector<64x32xi1>, vector<64x32xf32>
    %c62_i32 = arith.constant 62 : i32
    %14 = vector.broadcast %c62_i32 : i32 to vector<64x32xi32>
    %15 = arith.cmpi slt, %6, %14 : vector<64x32xi32>
    %c62_i32_11 = arith.constant 62 : i32
    %16 = tpu.dynamic_rotate %5 by %c62_i32_11 dim 0 : vector<64x32xf32>, i32 -> vector<64x32xf32>
    %cst_12 = arith.constant 0.000000e+00 : f32
    %17 = vector.broadcast %cst_12 : f32 to vector<64x32xf32>
    %18 = arith.select %15, %16, %17 : vector<64x32xi1>, vector<64x32xf32>
    %19 = tpu.concatenate %13, %5, %18 in 1 : vector<64x32xf32>, vector<64x32xf32>, vector<64x32xf32> -> vector<64x96xf32>
    %20 = arith.truncf %19 : vector<64x96xf32> to vector<64x96xbf16>
    %c0_13 = arith.constant 0 : index
    %c0_14 = arith.constant 0 : index
    %c0_15 = arith.constant 0 : index
    %21 = vector.load %arg3[%c0_13, %c0_14, %c0_15] : memref<3x96x32xbf16, #tpu.memory_space<vmem>>, vector<1x96x32xbf16>
    %22 = vector.shape_cast %21 : vector<1x96x32xbf16> to vector<96x32xbf16>
    %cst_16 = arith.constant dense<0.000000e+00> : vector<64x32xf32>
    %23 = tpu.matmul %20, %22, %cst_16 {dimension_numbers = #tpu.dot_dimension_numbers<[1], [0], [0], [1], [0, 0, 1, 1], [], []>} : vector<64x96xbf16>, vector<96x32xbf16>, vector<64x32xf32> -> vector<64x32xf32>
    %24 = vector.extract_strided_slice %7 {offsets = [0, 0], sizes = [1, 32], strides = [1, 1]} : vector<3x32xf32> to vector<1x32xf32>
    %25 = vector.broadcast %24 : vector<1x32xf32> to vector<64x32xf32>
    %26 = arith.addf %23, %25 : vector<64x32xf32>
    %cst_17 = arith.constant 0.000000e+00 : f32
    %27 = vector.broadcast %cst_17 : f32 to vector<64x32xf32>
    %28 = arith.maximumf %26, %27 : vector<64x32xf32>
    %29 = arith.truncf %28 : vector<64x32xf32> to vector<64x32xbf16>
    %c0_18 = arith.constant 0 : index
    %c0_19 = arith.constant 0 : index
    %c0_20 = arith.constant 0 : index
    %30 = vector.load %arg5[%c0_18, %c0_19, %c0_20] : memref<3x32x32xbf16, #tpu.memory_space<vmem>>, vector<1x32x32xbf16>
    %31 = vector.shape_cast %30 : vector<1x32x32xbf16> to vector<32x32xbf16>
    %cst_21 = arith.constant dense<0.000000e+00> : vector<64x32xf32>
    %32 = tpu.matmul %29, %31, %cst_21 {dimension_numbers = #tpu.dot_dimension_numbers<[1], [0], [0], [1], [0, 0, 1, 1], [], []>} : vector<64x32xbf16>, vector<32x32xbf16>, vector<64x32xf32> -> vector<64x32xf32>
    %33 = vector.extract_strided_slice %8 {offsets = [0, 0], sizes = [1, 32], strides = [1, 1]} : vector<3x32xf32> to vector<1x32xf32>
    %34 = vector.broadcast %33 : vector<1x32xf32> to vector<64x32xf32>
    %35 = arith.addf %32, %34 : vector<64x32xf32>
    %36 = arith.addf %5, %35 : vector<64x32xf32>
    %c4_i32 = arith.constant 4 : i32
    %37 = vector.broadcast %c4_i32 : i32 to vector<64x32xi32>
    %38 = arith.cmpi sge, %6, %37 : vector<64x32xi32>
    %c4_i32_22 = arith.constant 4 : i32
    %39 = tpu.dynamic_rotate %36 by %c4_i32_22 dim 0 : vector<64x32xf32>, i32 -> vector<64x32xf32>
    %cst_23 = arith.constant 0.000000e+00 : f32
    %40 = vector.broadcast %cst_23 : f32 to vector<64x32xf32>
    %41 = arith.select %38, %39, %40 : vector<64x32xi1>, vector<64x32xf32>
    %c60_i32 = arith.constant 60 : i32
    %42 = vector.broadcast %c60_i32 : i32 to vector<64x32xi32>
    %43 = arith.cmpi slt, %6, %42 : vector<64x32xi32>
    %c60_i32_24 = arith.constant 60 : i32
    %44 = tpu.dynamic_rotate %36 by %c60_i32_24 dim 0 : vector<64x32xf32>, i32 -> vector<64x32xf32>
    %cst_25 = arith.constant 0.000000e+00 : f32
    %45 = vector.broadcast %cst_25 : f32 to vector<64x32xf32>
    %46 = arith.select %43, %44, %45 : vector<64x32xi1>, vector<64x32xf32>
    %47 = tpu.concatenate %41, %36, %46 in 1 : vector<64x32xf32>, vector<64x32xf32>, vector<64x32xf32> -> vector<64x96xf32>
    %48 = arith.truncf %47 : vector<64x96xf32> to vector<64x96xbf16>
    %c1 = arith.constant 1 : index
    %c0_26 = arith.constant 0 : index
    %c0_27 = arith.constant 0 : index
    %49 = vector.load %arg3[%c1, %c0_26, %c0_27] : memref<3x96x32xbf16, #tpu.memory_space<vmem>>, vector<1x96x32xbf16>
    %50 = vector.shape_cast %49 : vector<1x96x32xbf16> to vector<96x32xbf16>
    %cst_28 = arith.constant dense<0.000000e+00> : vector<64x32xf32>
    %51 = tpu.matmul %48, %50, %cst_28 {dimension_numbers = #tpu.dot_dimension_numbers<[1], [0], [0], [1], [0, 0, 1, 1], [], []>} : vector<64x96xbf16>, vector<96x32xbf16>, vector<64x32xf32> -> vector<64x32xf32>
    %52 = vector.extract_strided_slice %7 {offsets = [1, 0], sizes = [1, 32], strides = [1, 1]} : vector<3x32xf32> to vector<1x32xf32>
    %53 = vector.broadcast %52 : vector<1x32xf32> to vector<64x32xf32>
    %54 = arith.addf %51, %53 : vector<64x32xf32>
    %cst_29 = arith.constant 0.000000e+00 : f32
    %55 = vector.broadcast %cst_29 : f32 to vector<64x32xf32>
    %56 = arith.maximumf %54, %55 : vector<64x32xf32>
    %57 = arith.truncf %56 : vector<64x32xf32> to vector<64x32xbf16>
    %c1_30 = arith.constant 1 : index
    %c0_31 = arith.constant 0 : index
    %c0_32 = arith.constant 0 : index
    %58 = vector.load %arg5[%c1_30, %c0_31, %c0_32] : memref<3x32x32xbf16, #tpu.memory_space<vmem>>, vector<1x32x32xbf16>
    %59 = vector.shape_cast %58 : vector<1x32x32xbf16> to vector<32x32xbf16>
    %cst_33 = arith.constant dense<0.000000e+00> : vector<64x32xf32>
    %60 = tpu.matmul %57, %59, %cst_33 {dimension_numbers = #tpu.dot_dimension_numbers<[1], [0], [0], [1], [0, 0, 1, 1], [], []>} : vector<64x32xbf16>, vector<32x32xbf16>, vector<64x32xf32> -> vector<64x32xf32>
    %61 = vector.extract_strided_slice %8 {offsets = [1, 0], sizes = [1, 32], strides = [1, 1]} : vector<3x32xf32> to vector<1x32xf32>
    %62 = vector.broadcast %61 : vector<1x32xf32> to vector<64x32xf32>
    %63 = arith.addf %60, %62 : vector<64x32xf32>
    %64 = arith.addf %36, %63 : vector<64x32xf32>
    %c8_i32 = arith.constant 8 : i32
    %65 = vector.broadcast %c8_i32 : i32 to vector<64x32xi32>
    %66 = arith.cmpi sge, %6, %65 : vector<64x32xi32>
    %c8_i32_34 = arith.constant 8 : i32
    %67 = tpu.dynamic_rotate %64 by %c8_i32_34 dim 0 : vector<64x32xf32>, i32 -> vector<64x32xf32>
    %cst_35 = arith.constant 0.000000e+00 : f32
    %68 = vector.broadcast %cst_35 : f32 to vector<64x32xf32>
    %69 = arith.select %66, %67, %68 : vector<64x32xi1>, vector<64x32xf32>
    %c56_i32 = arith.constant 56 : i32
    %70 = vector.broadcast %c56_i32 : i32 to vector<64x32xi32>
    %71 = arith.cmpi slt, %6, %70 : vector<64x32xi32>
    %c56_i32_36 = arith.constant 56 : i32
    %72 = tpu.dynamic_rotate %64 by %c56_i32_36 dim 0 : vector<64x32xf32>, i32 -> vector<64x32xf32>
    %cst_37 = arith.constant 0.000000e+00 : f32
    %73 = vector.broadcast %cst_37 : f32 to vector<64x32xf32>
    %74 = arith.select %71, %72, %73 : vector<64x32xi1>, vector<64x32xf32>
    %75 = tpu.concatenate %69, %64, %74 in 1 : vector<64x32xf32>, vector<64x32xf32>, vector<64x32xf32> -> vector<64x96xf32>
    %76 = arith.truncf %75 : vector<64x96xf32> to vector<64x96xbf16>
    %c2 = arith.constant 2 : index
    %c0_38 = arith.constant 0 : index
    %c0_39 = arith.constant 0 : index
    %77 = vector.load %arg3[%c2, %c0_38, %c0_39] : memref<3x96x32xbf16, #tpu.memory_space<vmem>>, vector<1x96x32xbf16>
    %78 = vector.shape_cast %77 : vector<1x96x32xbf16> to vector<96x32xbf16>
    %cst_40 = arith.constant dense<0.000000e+00> : vector<64x32xf32>
    %79 = tpu.matmul %76, %78, %cst_40 {dimension_numbers = #tpu.dot_dimension_numbers<[1], [0], [0], [1], [0, 0, 1, 1], [], []>} : vector<64x96xbf16>, vector<96x32xbf16>, vector<64x32xf32> -> vector<64x32xf32>
    %80 = vector.extract_strided_slice %7 {offsets = [2, 0], sizes = [1, 32], strides = [1, 1]} : vector<3x32xf32> to vector<1x32xf32>
    %81 = vector.broadcast %80 : vector<1x32xf32> to vector<64x32xf32>
    %82 = arith.addf %79, %81 : vector<64x32xf32>
    %cst_41 = arith.constant 0.000000e+00 : f32
    %83 = vector.broadcast %cst_41 : f32 to vector<64x32xf32>
    %84 = arith.maximumf %82, %83 : vector<64x32xf32>
    %85 = arith.truncf %84 : vector<64x32xf32> to vector<64x32xbf16>
    %c2_42 = arith.constant 2 : index
    %c0_43 = arith.constant 0 : index
    %c0_44 = arith.constant 0 : index
    %86 = vector.load %arg5[%c2_42, %c0_43, %c0_44] : memref<3x32x32xbf16, #tpu.memory_space<vmem>>, vector<1x32x32xbf16>
    %87 = vector.shape_cast %86 : vector<1x32x32xbf16> to vector<32x32xbf16>
    %cst_45 = arith.constant dense<0.000000e+00> : vector<64x32xf32>
    %88 = tpu.matmul %85, %87, %cst_45 {dimension_numbers = #tpu.dot_dimension_numbers<[1], [0], [0], [1], [0, 0, 1, 1], [], []>} : vector<64x32xbf16>, vector<32x32xbf16>, vector<64x32xf32> -> vector<64x32xf32>
    %89 = vector.extract_strided_slice %8 {offsets = [2, 0], sizes = [1, 32], strides = [1, 1]} : vector<3x32xf32> to vector<1x32xf32>
    %90 = vector.broadcast %89 : vector<1x32xf32> to vector<64x32xf32>
    %91 = arith.addf %88, %90 : vector<64x32xf32>
    %92 = arith.addf %64, %91 : vector<64x32xf32>
    %93 = arith.truncf %92 : vector<64x32xf32> to vector<64x32xbf16>
    %c0_46 = arith.constant 0 : index
    %c0_47 = arith.constant 0 : index
    %94 = vector.load %arg7[%c0_46, %c0_47] : memref<32x24xbf16, #tpu.memory_space<vmem>>, vector<32x24xbf16>
    %cst_48 = arith.constant dense<0.000000e+00> : vector<64x24xf32>
    %95 = tpu.matmul %93, %94, %cst_48 {dimension_numbers = #tpu.dot_dimension_numbers<[1], [0], [0], [1], [0, 0, 1, 1], [], []>} : vector<64x32xbf16>, vector<32x24xbf16>, vector<64x24xf32> -> vector<64x24xf32>
    %c0_49 = arith.constant 0 : index
    %c0_50 = arith.constant 0 : index
    %96 = vector.load %arg8[%c0_49, %c0_50] : memref<1x24xf32, #tpu.memory_space<vmem>>, vector<1x24xf32>
    %97 = vector.broadcast %96 : vector<1x24xf32> to vector<64x24xf32>
    %98 = arith.addf %95, %97 : vector<64x24xf32>
    %99 = vector.extract_strided_slice %98 {offsets = [0, 16], sizes = [64, 8], strides = [1, 1]} : vector<64x24xf32> to vector<64x8xf32>
    %cst_51 = arith.constant dense<0xFF800000> : vector<64xf32>
    %100 = vector.multi_reduction <maximumf>, %99, %cst_51 [1] : vector<64x8xf32> to vector<64xf32>
    %101 = vector.shape_cast %100 : vector<64xf32> to vector<64x1xf32>
    %102 = vector.broadcast %101 : vector<64x1xf32> to vector<64x8xf32>
    %103 = arith.subf %99, %102 : vector<64x8xf32>
    %104 = math.exp %103 : vector<64x8xf32>
    %cst_52 = arith.constant dense<0.000000e+00> : vector<64xf32>
    %105 = vector.multi_reduction <add>, %104, %cst_52 [1] : vector<64x8xf32> to vector<64xf32>
    %106 = vector.shape_cast %105 : vector<64xf32> to vector<64x1xf32>
    %107 = tpu.reciprocal %106 {approx = true} : vector<64x1xf32> -> vector<64x1xf32>
    %108 = vector.broadcast %107 : vector<64x1xf32> to vector<64x8xf32>
    %109 = arith.mulf %104, %108 : vector<64x8xf32>
    %110 = vector.extract_strided_slice %98 {offsets = [0, 0], sizes = [64, 16], strides = [1, 1]} : vector<64x24xf32> to vector<64x16xf32>
    %c0_53 = arith.constant 0 : index
    %c0_54 = arith.constant 0 : index
    %111 = vector.load %arg9[%c0_53, %c0_54] : memref<64x32xf32, #tpu.memory_space<vmem>>, vector<64x16xf32>
    tpu.vector_store %arg9[%c0_53, %c0_54], %110 {strides = array<i32>} : memref<64x32xf32, #tpu.memory_space<vmem>>, vector<64x16xf32>,
    %c0_55 = arith.constant 0 : index
    %c16 = arith.constant 16 : index
    %112 = vector.load %arg9[%c0_55, %c16] : memref<64x32xf32, #tpu.memory_space<vmem>>, vector<64x8xf32>
    tpu.vector_store %arg9[%c0_55, %c16], %109 {strides = array<i32>} : memref<64x32xf32, #tpu.memory_space<vmem>>, vector<64x8xf32>,
    %c0_56 = arith.constant 0 : index
    %c24 = arith.constant 24 : index
    %113 = vector.load %arg9[%c0_56, %c24] : memref<64x32xf32, #tpu.memory_space<vmem>>, vector<64x8xf32>
    tpu.vector_store %arg9[%c0_56, %c24], %99 {strides = array<i32>} : memref<64x32xf32, #tpu.memory_space<vmem>>, vector<64x8xf32>,
    return
  }
}

</mosaic_0001>

<bundles_post_ra>
// kernel: tpu_custom_call.1
= control target key start
LH: loop header
LB: loop body
LE: loop exit
PB: predicated region body
PF: predicated region fallthrough
CT: control target
= control target key end

     0   :  { %vm90_vm0 = vcmask 1041408   ;;  %vm77_vm1 = vcmask 162816   ;;  %v123_v14 = vlaneseq  ;;  %s1671_s22 = smov 32   ;;  %vm264_vm6 = vcmask 261120   ;;  %s1673_s29 = smov 8   ;;  %s2360_s1 = inlined_call_operand.vmem [shape: bf16[20,32], index: 1, kind: input, shape index: {}]   ;;  %s2361_s2 = inlined_call_operand.vmem [shape: f32[1,32], index: 2, kind: input, shape index: {}]   ;;  %s2362_s0 = inlined_call_operand.vmem [shape: bf16[64,20], index: 0, kind: input, shape index: {}]   ;;  %s2363_s3 = inlined_call_operand.vmem [shape: bf16[3,96,32], index: 3, kind: input, shape index: {}]   ;;  %s2364_s5 = inlined_call_operand.vmem [shape: bf16[3,32,32], index: 5, kind: input, shape index: {}]   ;;  %s2365_s4 = inlined_call_operand.vmem [shape: f32[3,32], index: 4, kind: input, shape index: {}]   ;;  %s2366_s6 = inlined_call_operand.vmem [shape: f32[3,32], index: 6, kind: input, shape index: {}]   ;;  %s2367_s7 = inlined_call_operand.vmem [shape: bf16[32,24], index: 7, kind: input, shape index: {}]   ;;  %s2368_s8 = inlined_call_operand.vmem [shape: f32[1,24], index: 8, kind: input, shape index: {}]   ;;  %s2369_s9 = inlined_call_operand.vmem [shape: f32[64,32], index: 9, kind: output, shape index: {}]  }
   0x1   :  { %v43_v0 = vld [vmem:[%s2360_s1 + $0x8] sm:$0x3]  ;;  %v1485_v4 = vld [vmem:[%s2360_s1] sm:$0xff]  ;;  %v1483_v7 = vld [vmem:[%s2362_s0 + $0x10] sm:$0xff]  ;;  %vm273_vm7 = vcmask 523264   ;;  %vm335_vm8 = vcmask 785408  }
   0x2   :  { %v73_v1 = vunpack.c.l.b16 %v43_v0  ;;  %v1481_v5 = vld [vmem:[%s2362_s0] sm:$0xff]  ;;  %v1482_v6 = vld [vmem:[%s2362_s0 + $0x8] sm:$0xff]  ;;  %v1484_v8 = vld [vmem:[%s2362_s0 + $0x18] sm:$0xff]  ;;  %v1753_v16 = vshrl.u32 %v123_v14, 7  ;;  %s1672_s0 = smov 64   ;;  %vm1231_vm12 = vcmask 130048  }
   0x3   :  { %v1637_v10 = vld [vmem:[%s2361_s2] ss:$0 sm:$0xff]  ;;  %v1491_v31 = vld [vmem:[%s2363_s3 + $0x28] sm:$0xff]  ;;  %v1489_v56 = vld [vmem:[%s2363_s3 + $0x18] sm:$0xff]  ;;  %vm1109_vm13 = vcmask 195712   ;;  %s1674_s20 = smov 112  }
   0x4   :  { %v75_v2 = vpack.c.b16 %v73_v1, %v73_v1  ;;  %vm183_vm2 = vcmp.lt.s32.totalorder %v1753_v16, 6  ;;  %350 = vmatpush.bf16.msra.mxu1 %v1491_v31  ;;  %v1490_v33 = vld [vmem:[%s2363_s3 + $0x20] sm:$0xff]  ;;  %v1800_v47 = vadd.s32 56, %v1753_v16  ;;  %v1488_v57 = vld [vmem:[%s2363_s3 + $0x10] sm:$0xff]  ;;  %v1487_v58 = vld [vmem:[%s2363_s3 + $0x8] sm:$0xff]  ;;  %vm150_vm4 = vcmp.lt.s32.totalorder %v1753_v16, 2 }
   0x5   :  { %v1486_v59 = vld [vmem:[%s2363_s3] sm:$0xff]  ;;  %vm134_vm5 = vcmp.ge.s32.totalorder %v1753_v16, 2  ;;  %vm471_vm9 = vcmp.lt.s32.totalorder %v1753_v16, 4  ;;  %vm455_vm11 = vcmp.ge.s32.totalorder %v1753_v16, 4  ;;  %vm1190_vm14 = vcmask 64512  }
   0x6   :  { %v92_v3 = vsel %vm90_vm0, %v75_v2, 0  ;;  %vm174_vm3 = vcmp.lt.s32.totalorder %v1800_v47, 62  ;;  %vm495_vm10 = vcmp.lt.s32.totalorder %v1800_v47, 60  ;;  %v1498_v47 = vld [vmem:[%s2363_s3 + $0x50] sm:$0xff]  ;;  %vm1280_vm15 = vcmask 261312  }
   0x7   :  { %100 = vmatpush.bf16.msra.mxu0 %v92_v3 }
   0x8   :  { %351 = vmatpush.bf16.msra.mxu1 %v1490_v33 }
   0xb   :  { %101 = vmatpush.bf16.msra.mxu0 %v1485_v4 }
   0xc   :  { %352 = vmatpush.bf16.msra.mxu1 %v1489_v56 }
   0xe   :  { %1313 = vmatmul.msk.bf16.vlgmr.msra.gmra.mxu0 %vm77_vm1, %v1481_v5 }
  0x10   :  { %353 = vmatpush.bf16.msra.mxu1 %v1488_v57 }
  0x14   :  { %354 = vmatpush.bf16.msra.mxu1 %v1487_v58 }
  0x18   :  { %355 = vmatpush.bf16.msra.mxu1 %v1486_v59 }
  0x1e   :  { %1314 = vmatmul.msk.bf16.gmra.mxu0 %vm77_vm1, %v1482_v6 }
  0x2e   :  { %1315 = vmatmul.msk.bf16.gmra.mxu0 %vm77_vm1, %v1483_v7 }
  0x3e   :  { %1316 = vmatmul.msk.bf16.gmra.mxu0 %vm77_vm1, %v1484_v8 }
  0x8b   :  { %v103_v9 = vpop.f32.mrf.mxu0 }
  0x8c   :  { %v1746_v12 = vadd.f32 %v1637_v10, %v103_v9 }
  0x8e   :  { %v175_v20 = vrot.slane %v1746_v12, 2  ;;  %v142_v62 = vrot.slane %v1746_v12, 6 }
  0x93   :  { %v105_v11 = vpop.f32.mrf.mxu0 }
  0x94   :  { %v1748_v13 = vadd.f32 %v1637_v10, %v105_v11 }
  0x96   :  { %v1517_v15 = vpack.i.bf16 %v1748_v13, %v1746_v12  ;;  %v176_v18 = vrot.slane %v1748_v13, 2  ;;  %v143_v63 = vrot.slane %v1748_v13, 6 }
  0x98   :  { %1518 = vrot.lane.b32.xlu0 %v1517_v15, %s1671_s22  ;;  %v190_v23 = vsel %vm183_vm2, %v175_v20, %v176_v18  ;;  %v157_v4 = vsel %vm150_vm4, %v142_v62, %v143_v63 }
  0x9b   :  { %v108_v17 = vpop.f32.mrf.mxu0 }
  0x9c   :  { %v1756_v19 = vadd.f32 %v1637_v10, %v108_v17 }
  0x9e   :  { %v177_v21 = vrot.slane %v1756_v19, 2  ;;  %v144_v17 = vrot.slane %v1756_v19, 6 }
  0xa0   :  { %v189_v22 = vsel %vm183_vm2, %v176_v18, %v177_v21 }
  0xa1   :  { %v1522_v24 = vpack.i.bf16 %v189_v22, %v190_v23 }
  0xa3   :  { %v110_v25 = vpop.f32.mrf.mxu0  ;;  %1523 = vrot.lane.b32.xlu0 %v1522_v24, %s1672_s0  ;;  %v156_v24 = vsel %vm150_vm4, %v143_v63, %v144_v17 }
  0xa4   :  { %v1766_v26 = vadd.f32 %v1637_v10, %v110_v25 }
  0xa6   :  { %v1527_v27 = vpack.i.bf16 %v1766_v26, %v1756_v19  ;;  %v178_v29 = vrot.slane %v1766_v26, 2  ;;  %v145_v18 = vrot.slane %v1766_v26, 6 }
  0xa8   :  { %1528 = vrot.lane.b32.xlu1 %v1527_v27, %s1671_s22  ;;  %v188_v35 = vsel %vm183_vm2, %v177_v21, %v178_v29  ;;  %v155_v23 = vsel %vm150_vm4, %v144_v17, %v145_v18 }
  0xab   :  { %v113_v28 = vpop.f32.mrf.mxu0 }
  0xac   :  { %v1772_v30 = vadd.f32 %v1637_v10, %v113_v28 }
  0xae   :  { %v179_v32 = vrot.slane %v1772_v30, 2 }
  0xb0   :  { %v187_v34 = vsel %vm183_vm2, %v178_v29, %v179_v32 }
  0xb1   :  { %v1532_v36 = vpack.i.bf16 %v187_v34, %v188_v35 }
  0xb3   :  { %v115_v37 = vpop.f32.mrf.mxu0  ;;  %1533 = vrot.lane.b32.xlu1 %v1532_v36, %s1672_s0  ;;  %v146_v36 = vrot.slane %v1772_v30, 6 }
  0xb4   :  { %v1786_v38 = vadd.f32 %v1637_v10, %v115_v37 }
  0xb6   :  { %v1537_v39 = vpack.i.bf16 %v1786_v38, %v1772_v30  ;;  %v180_v41 = vrot.slane %v1786_v38, 2  ;;  %v147_v37 = vrot.slane %v1786_v38, 6 }
  0xb8   :  { %1538 = vrot.lane.b32.xlu2 %v1537_v39, %s1671_s22  ;;  %v186_v45 = vsel %vm183_vm2, %v179_v32, %v180_v41 }
  0xbb   :  { %v118_v40 = vpop.f32.mrf.mxu0 }
  0xbc   :  { %v1792_v42 = vadd.f32 %v1637_v10, %v118_v40 }
  0xbe   :  { %v181_v43 = vrot.slane %v1792_v42, 2 }
  0xc0   :  { %v185_v44 = vsel %vm183_vm2, %v180_v41, %v181_v43 }
  0xc1   :  { %v1542_v46 = vpack.i.bf16 %v185_v44, %v186_v45  ;;  %v153_v44 = vsel %vm150_vm4, %v146_v36, %v147_v37  ;;  %v154_v45 = vsel %vm150_vm4, %v145_v18, %v146_v36 }
  0xc3   :  { %v120_v48 = vpop.f32.mrf.mxu0  ;;  %1543 = vrot.lane.b32.xlu2 %v1542_v46, %s1672_s0 }
  0xc4   :  { %v1803_v49 = vadd.f32 %v1637_v10, %v120_v48 }
  0xc6   :  { %v182_v50 = vrot.slane %v1803_v49, 2  ;;  %v1547_v51 = vpack.i.bf16 %v1803_v49, %v1792_v42  ;;  %v149_v61 = vrot.slane %v1803_v49, 6 }
  0xc8   :  { %1548 = vrot.lane.b32.xlu0 %v1547_v51, %s1671_s22  ;;  %v184_v52 = vsel %vm183_vm2, %v181_v43, %v182_v50  ;;  %v191_v53 = vsel %vm183_vm2, %v182_v50, %v175_v20  ;;  %v158_v2 = vsel %vm150_vm4, %v149_v61, %v142_v62 }
  0xc9   :  { %v199_v54 = vsel %vm174_vm3, %v191_v53, 0.0  ;;  %v159_v5 = vsel %vm134_vm5, %v158_v2, 0.0 }
  0xca   :  { %v1552_v55 = vpack.i.bf16 %v199_v54, %v184_v52 }
  0xcc   :  { %1553 = vrot.lane.b32.xlu1 %v1552_v55, %s1672_s0  ;;  %v148_v55 = vrot.slane %v1792_v42, 6 }
  0xce   :  { %v152_v62 = vsel %vm150_vm4, %v147_v37, %v148_v55 }
 0x10a   :  { %v1519_v60 = vpop.permute.xlu0 %1518 }
 0x10b   :  { %v1521_v0 = vunpack.i.h.bf16 %v1519_v60  ;;  %v1520_v1 = vunpack.i.l.bf16 %v1519_v60  ;;  %v151_v60 = vsel %vm150_vm4, %v148_v55, %v149_v61  ;;  %v1492_v61 = vld [vmem:[%s2364_s5] sm:$0xff] }
 0x10d   :  { %v265_v8 = vsel %vm264_vm6, %v159_v5, %v1520_v1  ;;  %v266_v9 = vsel %vm264_vm6, %v157_v4, %v1521_v0  ;;  %v1493_v4 = vld [vmem:[%s2364_s5 + $0x8] sm:$0xff]  ;;  %v1882_v5 = vld [vmem:[%s2365_s4] sm:$0x7] }
 0x10e   :  { %424 = vmatpush.bf16.msra.mxu2 %v1493_v4 }
 0x112   :  { %v1539_v28 = vpop.permute.xlu2 %1538  ;;  %425 = vmatpush.bf16.msra.mxu2 %v1492_v61 }
 0x113   :  { %v1541_v39 = vunpack.i.h.bf16 %v1539_v28  ;;  %v1540_v40 = vunpack.i.l.bf16 %v1539_v28 }
 0x115   :  { %v1524_v3 = vpop.permute.xlu0 %1523  ;;  %v269_v46 = vsel %vm264_vm6, %v154_v45, %v1540_v40  ;;  %v270_v48 = vsel %vm264_vm6, %v153_v44, %v1541_v39 }
 0x116   :  { %v1526_v6 = vunpack.i.h.bf16 %v1524_v3  ;;  %v1525_v7 = vunpack.i.l.bf16 %v1524_v3 }
 0x118   :  { %v274_v10 = vsel %vm273_vm7, %v265_v8, %v1525_v7  ;;  %v275_v11 = vsel %vm273_vm7, %v266_v9, %v1526_v6  ;;  %v298_v7 = vperm.slane %v1882_v5, 0 }
 0x119   :  { %v282_v14 = vpack.c.bf16 %v275_v11, %v274_v10 }
 0x11a   :  { %v1529_v15 = vpop.permute.xlu1 %1528 }
 0x11b   :  { %1341 = vmatmul.msk.bf16.vlgmr.msra.gmra.mxu1 %vm335_vm8, %v282_v14  ;;  %v1531_v20 = vunpack.i.h.bf16 %v1529_v15  ;;  %v1530_v21 = vunpack.i.l.bf16 %v1529_v15 }
 0x11d   :  { %v267_v29 = vsel %vm264_vm6, %v156_v24, %v1530_v21  ;;  %v268_v31 = vsel %vm264_vm6, %v155_v23, %v1531_v20  ;;  %v1544_v35 = vpop.permute.xlu2 %1543 }
 0x11e   :  { %v1546_v41 = vunpack.i.h.bf16 %v1544_v35  ;;  %v1545_v43 = vunpack.i.l.bf16 %v1544_v35 }
 0x120   :  { %v278_v50 = vsel %vm273_vm7, %v269_v46, %v1545_v43  ;;  %v279_v51 = vsel %vm273_vm7, %v270_v48, %v1546_v41  ;;  %v1892_v43 = vld [vmem:[%s2366_s6] sm:$0x7] }
 0x121   :  { %v284_v52 = vpack.c.bf16 %v279_v51, %v278_v50  ;;  %v393_v45 = vperm.slane %v1892_v43, 0 }
 0x125   :  { %v1534_v22 = vpop.permute.xlu1 %1533 }
 0x126   :  { %v1536_v25 = vunpack.i.h.bf16 %v1534_v22  ;;  %v1535_v27 = vunpack.i.l.bf16 %v1534_v22 }
 0x128   :  { %v276_v32 = vsel %vm273_vm7, %v267_v29, %v1535_v27  ;;  %v277_v33 = vsel %vm273_vm7, %v268_v31, %v1536_v25 }
 0x129   :  { %v283_v34 = vpack.c.bf16 %v277_v33, %v276_v32 }
 0x12b   :  { %1342 = vmatmul.msk.bf16.gmra.mxu1 %vm335_vm8, %v283_v34 }
 0x13a   :  { %v1549_v53 = vpop.permute.xlu0 %1548 }
 0x13b   :  { %1343 = vmatmul.msk.bf16.gmra.mxu1 %vm335_vm8, %v284_v52  ;;  %v1551_v56 = vunpack.i.h.bf16 %v1549_v53  ;;  %v1550_v57 = vunpack.i.l.bf16 %v1549_v53 }
 0x13d   :  { %v272_v63 = vsel %vm264_vm6, %v151_v60, %v1551_v56  ;;  %v271_v0 = vsel %vm264_vm6, %v152_v62, %v1550_v57 }
 0x13e   :  { %v1554_v54 = vpop.permute.xlu1 %1553 }
 0x13f   :  { %v1556_v58 = vunpack.i.h.bf16 %v1554_v54  ;;  %v1555_v59 = vunpack.i.l.bf16 %v1554_v54 }
 0x141   :  { %v280_v1 = vsel %vm273_vm7, %v271_v0, %v1555_v59  ;;  %v281_v2 = vsel %vm273_vm7, %v272_v63, %v1556_v58 }
 0x142   :  { %v285_v3 = vpack.c.bf16 %v281_v2, %v280_v1 }
 0x14b   :  { %1344 = vmatmul.msk.bf16.gmra.mxu1 %vm335_vm8, %v285_v3 }
 0x198   :  { %v357_v6 = vpop.f32.mrf.mxu1 }
 0x199   :  { %v358_v8 = vadd.f32 %v357_v6, %v298_v7 }
 0x19b   :  { %v377_v11 = vmax.f32 %v358_v8, 0.0 }
 0x1a0   :  { %v359_v9 = vpop.f32.mrf.mxu1 }
 0x1a1   :  { %v360_v10 = vadd.f32 %v359_v9, %v298_v7 }
 0x1a3   :  { %v378_v14 = vmax.f32 %v360_v10, 0.0 }
 0x1a5   :  { %v385_v15 = vpack.c.bf16 %v378_v14, %v377_v11 }
 0x1a7   :  { %1353 = vmatmul.msk.bf16.vlgmr.msra.gmra.mxu2 %vm264_vm6, %v385_v15 }
 0x1a8   :  { %v362_v17 = vpop.f32.mrf.mxu1 }
 0x1a9   :  { %v363_v18 = vadd.f32 %v362_v17, %v298_v7 }
 0x1ab   :  { %v379_v22 = vmax.f32 %v363_v18, 0.0 }
 0x1b0   :  { %v364_v20 = vpop.f32.mrf.mxu1 }
 0x1b1   :  { %v365_v21 = vadd.f32 %v364_v20, %v298_v7 }
 0x1b3   :  { %v380_v23 = vmax.f32 %v365_v21, 0.0 }
 0x1b5   :  { %v386_v24 = vpack.c.bf16 %v380_v23, %v379_v22 }
 0x1b7   :  { %1354 = vmatmul.msk.bf16.gmra.mxu2 %vm264_vm6, %v386_v24 }
 0x1b8   :  { %v367_v25 = vpop.f32.mrf.mxu1 }
 0x1b9   :  { %v368_v27 = vadd.f32 %v367_v25, %v298_v7 }
 0x1bb   :  { %v381_v31 = vmax.f32 %v368_v27, 0.0 }
 0x1c0   :  { %v369_v28 = vpop.f32.mrf.mxu1 }
 0x1c1   :  { %v370_v29 = vadd.f32 %v369_v28, %v298_v7 }
 0x1c3   :  { %v382_v32 = vmax.f32 %v370_v29, 0.0 }
 0x1c5   :  { %v387_v33 = vpack.c.bf16 %v382_v32, %v381_v31  ;;  %v1499_v31 = vld [vmem:[%s2363_s3 + $0x58] sm:$0xff]  ;;  %v1497_v32 = vld [vmem:[%s2363_s3 + $0x48] sm:$0xff] }
 0x1c6   :  { %652 = vmatpush.bf16.msra.mxu3 %v1499_v31 }
 0x1c7   :  { %1355 = vmatmul.msk.bf16.gmra.mxu2 %vm264_vm6, %v387_v33  ;;  %v1496_v33 = vld [vmem:[%s2363_s3 + $0x40] sm:$0xff] }
 0x1c8   :  { %v372_v34 = vpop.f32.mrf.mxu1 }
 0x1c9   :  { %v373_v35 = vadd.f32 %v372_v34, %v298_v7  ;;  %v1495_v34 = vld [vmem:[%s2363_s3 + $0x38] sm:$0xff] }
 0x1ca   :  { %653 = vmatpush.bf16.msra.mxu3 %v1498_v47 }
 0x1cb   :  { %v383_v39 = vmax.f32 %v373_v35, 0.0  ;;  %v1494_v35 = vld [vmem:[%s2363_s3 + $0x30] sm:$0xff] }
 0x1ce   :  { %654 = vmatpush.bf16.msra.mxu3 %v1497_v32  ;;  %v601_v32 = vperm.slane %v1882_v5, 1 }
 0x1d0   :  { %v374_v36 = vpop.f32.mrf.mxu1 }
 0x1d1   :  { %v375_v37 = vadd.f32 %v374_v36, %v298_v7 }
 0x1d2   :  { %655 = vmatpush.bf16.msra.mxu3 %v1496_v33 }
 0x1d3   :  { %v384_v40 = vmax.f32 %v375_v37, 0.0 }
 0x1d5   :  { %v388_v41 = vpack.c.bf16 %v384_v40, %v383_v39 }
 0x1d6   :  { %656 = vmatpush.bf16.msra.mxu3 %v1495_v34 }
 0x1d7   :  { %1356 = vmatmul.msk.bf16.gmra.mxu2 %vm264_vm6, %v388_v41 }
 0x1da   :  { %657 = vmatpush.bf16.msra.mxu3 %v1494_v35 }
 0x22a   :  { %v427_v44 = vpop.f32.mrf.mxu2 }
 0x22b   :  { %v428_v46 = vadd.f32 %v427_v44, %v393_v45 }
 0x22d   :  { %v1896_v51 = vadd.f32 %v428_v46, %v1746_v12 }
 0x22f   :  { %v463_v12 = vrot.slane %v1896_v51, 4 }
 0x232   :  { %v429_v48 = vpop.f32.mrf.mxu2 }
 0x233   :  { %v430_v50 = vadd.f32 %v429_v48, %v393_v45 }
 0x235   :  { %v1899_v52 = vadd.f32 %v430_v50, %v1748_v13 }
 0x237   :  { %v1557_v53 = vpack.i.bf16 %v1899_v52, %v1896_v51  ;;  %v464_v56 = vrot.slane %v1899_v52, 4 }
 0x239   :  { %1558 = vrot.lane.b32.xlu2 %v1557_v53, %s1671_s22  ;;  %v1917_v59 = vsel %vm471_vm9, %v463_v12, %v464_v56 }
 0x23a   :  { %v432_v54 = vpop.f32.mrf.mxu2 }
 0x23b   :  { %v433_v55 = vadd.f32 %v432_v54, %v393_v45 }
 0x23d   :  { %v1906_v57 = vadd.f32 %v433_v55, %v1756_v19 }
 0x23f   :  { %v465_v58 = vrot.slane %v1906_v57, 4 }
 0x241   :  { %v1913_v13 = vsel %vm471_vm9, %v464_v56, %v465_v58 }
 0x242   :  { %v434_v60 = vpop.f32.mrf.mxu2  ;;  %v1562_v62 = vpack.i.bf16 %v1913_v13, %v1917_v59 }
 0x243   :  { %v435_v19 = vadd.f32 %v434_v60, %v393_v45 }
 0x244   :  { %1563 = vrot.lane.b32.xlu0 %v1562_v62, %s1672_s0 }
 0x245   :  { %v1923_v63 = vadd.f32 %v435_v19, %v1766_v26 }
 0x247   :  { %v1567_v0 = vpack.i.bf16 %v1923_v63, %v1906_v57  ;;  %v466_v3 = vrot.slane %v1923_v63, 4 }
 0x249   :  { %1568 = vrot.lane.b32.xlu1 %v1567_v0, %s1671_s22  ;;  %v476_v26 = vsel %vm471_vm9, %v465_v58, %v466_v3 }
 0x24a   :  { %v437_v1 = vpop.f32.mrf.mxu2 }
 0x24b   :  { %v438_v2 = vadd.f32 %v437_v1, %v393_v45 }
 0x24d   :  { %v1930_v4 = vadd.f32 %v438_v2, %v1772_v30  ;;  %v1501_v2 = vld [vmem:[%s2364_s5 + $0x18] sm:$0xff] }
 0x24e   :  { %727 = vmatpush.bf16.msrb.mxu0 %v1501_v2  ;;  %v696_v2 = vperm.slane %v1892_v43, 1 }
 0x24f   :  { %v467_v61 = vrot.slane %v1930_v4, 4 }
 0x251   :  { %v1935_v6 = vsel %vm471_vm9, %v466_v3, %v467_v61 }
 0x252   :  { %v439_v7 = vpop.f32.mrf.mxu2  ;;  %v1572_v8 = vpack.i.bf16 %v1935_v6, %v476_v26 }
 0x253   :  { %v440_v9 = vadd.f32 %v439_v7, %v393_v45 }
 0x254   :  { %1573 = vrot.lane.b32.xlu2 %v1572_v8, %s1672_s0 }
 0x255   :  { %v1942_v10 = vadd.f32 %v440_v9, %v1786_v38 }
 0x257   :  { %v1577_v30 = vpack.i.bf16 %v1942_v10, %v1930_v4  ;;  %v468_v15 = vrot.slane %v1942_v10, 4 }
 0x259   :  { %1578 = vrot.lane.b32.xlu0 %v1577_v30, %s1671_s22  ;;  %v1958_v38 = vsel %vm471_vm9, %v467_v61, %v468_v15 }
 0x25a   :  { %v442_v11 = vpop.f32.mrf.mxu2 }
 0x25b   :  { %v443_v14 = vadd.f32 %v442_v11, %v393_v45 }
 0x25d   :  { %v1949_v17 = vadd.f32 %v443_v14, %v1792_v42 }
 0x25f   :  { %v469_v18 = vrot.slane %v1949_v17, 4 }
 0x261   :  { %v1954_v20 = vsel %vm471_vm9, %v468_v15, %v469_v18 }
 0x262   :  { %v444_v21 = vpop.f32.mrf.mxu2  ;;  %v1582_v22 = vpack.i.bf16 %v1954_v20, %v1958_v38 }
 0x263   :  { %v445_v23 = vadd.f32 %v444_v21, %v393_v45 }
 0x264   :  { %1583 = vrot.lane.b32.xlu1 %v1582_v22, %s1672_s0 }
 0x265   :  { %v1964_v42 = vadd.f32 %v445_v23, %v1803_v49 }
 0x267   :  { %v470_v24 = vrot.slane %v1964_v42, 4  ;;  %v1587_v25 = vpack.i.bf16 %v1964_v42, %v1949_v17 }
 0x269   :  { %1588 = vrot.lane.b32.xlu2 %v1587_v25, %s1671_s22  ;;  %v1973_v27 = vsel %vm471_vm9, %v469_v18, %v470_v24  ;;  %v479_v28 = vsel %vm471_vm9, %v470_v24, %v463_v12 }
 0x26a   :  { %v503_v29 = vsel %vm495_vm10, %v479_v28, 0.0  ;;  %v480_v41 = vsel %vm455_vm11, %v479_v28, 0.0 }
 0x26b   :  { %v1592_v49 = vpack.i.bf16 %v503_v29, %v1973_v27 }
 0x26d   :  { %1593 = vrot.lane.b32.xlu0 %v1592_v49, %s1672_s0 }
 0x293   :  { %v1559_v36 = vpop.permute.xlu2 %1558 }
 0x294   :  { %v1561_v37 = vunpack.i.h.bf16 %v1559_v36  ;;  %v1560_v39 = vunpack.i.l.bf16 %v1559_v36 }
 0x296   :  { %v568_v46 = vsel %vm264_vm6, %v480_v41, %v1560_v39  ;;  %v569_v48 = vsel %vm264_vm6, %v1917_v59, %v1561_v37 }
 0x2ae   :  { %v1574_v12 = vpop.permute.xlu2 %1573 }
 0x2af   :  { %v1576_v62 = vunpack.i.h.bf16 %v1574_v12  ;;  %v1575_v19 = vunpack.i.l.bf16 %v1574_v12 }
 0x2b6   :  { %v1564_v40 = vpop.permute.xlu0 %1563 }
 0x2b7   :  { %v1566_v44 = vunpack.i.h.bf16 %v1564_v40  ;;  %v1565_v45 = vunpack.i.l.bf16 %v1564_v40 }
 0x2b9   :  { %v576_v50 = vsel %vm273_vm7, %v568_v46, %v1565_v45  ;;  %v577_v53 = vsel %vm273_vm7, %v569_v48, %v1566_v44 }
 0x2ba   :  { %v584_v54 = vpack.c.bf16 %v577_v53, %v576_v50 }
 0x2bb   :  { %v1569_v55 = vpop.permute.xlu1 %1568 }
 0x2bc   :  { %1393 = vmatmul.msk.bf16.vlgmr.msra.gmra.mxu3 %vm335_vm8, %v584_v54  ;;  %v1571_v16 = vunpack.i.h.bf16 %v1569_v55  ;;  %v1570_v56 = vunpack.i.l.bf16 %v1569_v55 }
 0x2be   :  { %v570_v58 = vsel %vm264_vm6, %v1913_v13, %v1570_v56  ;;  %v571_v60 = vsel %vm264_vm6, %v476_v26, %v1571_v16  ;;  %v1500_v13 = vld [vmem:[%s2364_s5 + $0x10] sm:$0xff] }
 0x2bf   :  { %v578_v59 = vsel %vm273_vm7, %v570_v58, %v1575_v19  ;;  %v579_v0 = vsel %vm273_vm7, %v571_v60, %v1576_v62  ;;  %728 = vmatpush.bf16.msrb.mxu0 %v1500_v13 }
 0x2c0   :  { %v585_v1 = vpack.c.bf16 %v579_v0, %v578_v59 }
 0x2c3   :  { %v1589_v21 = vpop.permute.xlu2 %1588 }
 0x2c4   :  { %v1591_v23 = vunpack.i.h.bf16 %v1589_v21  ;;  %v1590_v24 = vunpack.i.l.bf16 %v1589_v21 }
 0x2c6   :  { %v575_v29 = vsel %vm264_vm6, %v1973_v27, %v1591_v23  ;;  %v1506_v23 = vld [vmem:[%s2363_s3 + $0x80] sm:$0xff] }
 0x2cb   :  { %v1579_v3 = vpop.permute.xlu0 %1578 }
 0x2cc   :  { %1394 = vmatmul.msk.bf16.gmra.mxu3 %vm335_vm8, %v585_v1  ;;  %v1581_v61 = vunpack.i.h.bf16 %v1579_v3  ;;  %v1580_v26 = vunpack.i.l.bf16 %v1579_v3 }
 0x2ce   :  { %v573_v30 = vsel %vm264_vm6, %v1958_v38, %v1581_v61  ;;  %v572_v11 = vsel %vm264_vm6, %v1935_v6, %v1580_v26  ;;  %v574_v38 = vsel %vm264_vm6, %v1954_v20, %v1590_v24 }
 0x2d6   :  { %v1584_v7 = vpop.permute.xlu1 %1583 }
 0x2d7   :  { %v1586_v8 = vunpack.i.h.bf16 %v1584_v7  ;;  %v1585_v9 = vunpack.i.l.bf16 %v1584_v7 }
 0x2d9   :  { %v580_v14 = vsel %vm273_vm7, %v572_v11, %v1585_v9  ;;  %v581_v15 = vsel %vm273_vm7, %v573_v30, %v1586_v8 }
 0x2da   :  { %v586_v18 = vpack.c.bf16 %v581_v15, %v580_v14 }
 0x2dc   :  { %1395 = vmatmul.msk.bf16.gmra.mxu3 %vm335_vm8, %v586_v18 }
 0x2df   :  { %v1594_v22 = vpop.permute.xlu0 %1593 }
 0x2e0   :  { %v1596_v25 = vunpack.i.h.bf16 %v1594_v22  ;;  %v1595_v28 = vunpack.i.l.bf16 %v1594_v22 }
 0x2e2   :  { %v582_v6 = vsel %vm273_vm7, %v574_v38, %v1595_v28  ;;  %v583_v49 = vsel %vm273_vm7, %v575_v29, %v1596_v25  ;;  %v1505_v25 = vld [vmem:[%s2363_s3 + $0x78] sm:$0xff]  ;;  %v1504_v38 = vld [vmem:[%s2363_s3 + $0x70] sm:$0xff] }
 0x2e3   :  { %v587_v31 = vpack.c.bf16 %v583_v49, %v582_v6 }
 0x2ec   :  { %1396 = vmatmul.msk.bf16.gmra.mxu3 %vm335_vm8, %v587_v31 }
 0x33f   :  { %v659_v47 = vpop.f32.mrf.mxu3 }
 0x340   :  { %v660_v33 = vadd.f32 %v659_v47, %v601_v32 }
 0x342   :  { %v679_v36 = vmax.f32 %v660_v33, 0.0 }
 0x347   :  { %v661_v34 = vpop.f32.mrf.mxu3 }
 0x348   :  { %v662_v35 = vadd.f32 %v661_v34, %v601_v32 }
 0x34a   :  { %v680_v37 = vmax.f32 %v662_v35, 0.0 }
 0x34c   :  { %v687_v39 = vpack.c.bf16 %v680_v37, %v679_v36  ;;  %v1502_v37 = vld [vmem:[%s2363_s3 + $0x60] sm:$0xff] }
 0x34e   :  { %1409 = vmatmul.msk.bf16.vlgmr.msrb.gmra.mxu0 %vm264_vm6, %v687_v39 }
 0x34f   :  { %v664_v27 = vpop.f32.mrf.mxu3 }
 0x350   :  { %v665_v20 = vadd.f32 %v664_v27, %v601_v32 }
 0x352   :  { %v681_v44 = vmax.f32 %v665_v20, 0.0 }
 0x357   :  { %v666_v40 = vpop.f32.mrf.mxu3 }
 0x358   :  { %v667_v41 = vadd.f32 %v666_v40, %v601_v32 }
 0x35a   :  { %v682_v45 = vmax.f32 %v667_v41, 0.0 }
 0x35c   :  { %v688_v46 = vpack.c.bf16 %v682_v45, %v681_v44 }
 0x35e   :  { %1410 = vmatmul.msk.bf16.gmra.mxu0 %vm264_vm6, %v688_v46 }
 0x35f   :  { %v669_v48 = vpop.f32.mrf.mxu3 }
 0x360   :  { %v670_v50 = vadd.f32 %v669_v48, %v601_v32 }
 0x362   :  { %v683_v55 = vmax.f32 %v670_v50, 0.0 }
 0x367   :  { %v671_v53 = vpop.f32.mrf.mxu3 }
 0x368   :  { %v672_v54 = vadd.f32 %v671_v53, %v601_v32 }
 0x36a   :  { %v684_v16 = vmax.f32 %v672_v54, 0.0 }
 0x36c   :  { %v689_v56 = vpack.c.bf16 %v684_v16, %v683_v55 }
 0x36e   :  { %1411 = vmatmul.msk.bf16.gmra.mxu0 %vm264_vm6, %v689_v56 }
 0x36f   :  { %v674_v12 = vpop.f32.mrf.mxu3 }
 0x370   :  { %v675_v58 = vadd.f32 %v674_v12, %v601_v32 }
 0x372   :  { %v685_v19 = vmax.f32 %v675_v58, 0.0 }
 0x377   :  { %v676_v60 = vpop.f32.mrf.mxu3 }
 0x378   :  { %v677_v62 = vadd.f32 %v676_v60, %v601_v32 }
 0x37a   :  { %v686_v59 = vmax.f32 %v677_v62, 0.0 }
 0x37c   :  { %v690_v0 = vpack.c.bf16 %v686_v59, %v685_v19 }
 0x37e   :  { %1412 = vmatmul.msk.bf16.gmra.mxu0 %vm264_vm6, %v690_v0  ;;  %v1509_v0 = vld [vmem:[%s2364_s5 + $0x28] sm:$0xff] }
 0x37f   :  { %1013 = vmatpush.bf16.msrb.mxu1 %v1509_v0 }
 0x3cb   :  { %v730_v1 = vpop.f32.mrf.mxu0 }
 0x3cc   :  { %v731_v13 = vadd.f32 %v730_v1, %v696_v2  ;;  %v1508_v1 = vld [vmem:[%s2364_s5 + $0x20] sm:$0xff] }
 0x3cd   :  { %1014 = vmatpush.bf16.msrb.mxu1 %v1508_v1  ;;  %v982_v1 = vperm.slane %v1892_v43, 2 }
 0x3ce   :  { %v2037_v26 = vadd.f32 %v731_v13, %v1896_v51 }
 0x3d3   :  { %v732_v3 = vpop.f32.mrf.mxu0 }
 0x3d4   :  { %v733_v61 = vadd.f32 %v732_v3, %v696_v2 }
 0x3d6   :  { %v2040_v7 = vadd.f32 %v733_v61, %v1899_v52 }
 0x3d8   :  { %v1597_v8 = vpack.i.bf16 %v2040_v7, %v2037_v26 }
 0x3da   :  { %1598 = vrot.lane.b32.xlu1 %v1597_v8, %s1671_s22 }
 0x3db   :  { %v735_v9 = vpop.f32.mrf.mxu0 }
 0x3dc   :  { %v736_v30 = vadd.f32 %v735_v9, %v696_v2 }
 0x3de   :  { %v2046_v11 = vadd.f32 %v736_v30, %v1906_v57  ;;  %v1507_v57 = vld [vmem:[%s2363_s3 + $0x88] sm:$0xff] }
 0x3df   :  { %938 = vmatpush.bf16.msrb.mxu2 %v1507_v57 }
 0x3e0   :  { %v1602_v14 = vpack.i.bf16 %v2046_v11, %v2040_v7 }
 0x3e2   :  { %1603 = vrot.lane.b32.xlu2 %v1602_v14, %s1672_s0 }
 0x3e3   :  { %v737_v51 = vpop.f32.mrf.mxu0  ;;  %939 = vmatpush.bf16.msrb.mxu2 %v1506_v23 }
 0x3e4   :  { %v738_v15 = vadd.f32 %v737_v51, %v696_v2 }
 0x3e6   :  { %v2052_v52 = vadd.f32 %v738_v15, %v1923_v63 }
 0x3e7   :  { %940 = vmatpush.bf16.msrb.mxu2 %v1505_v25 }
 0x3e8   :  { %v1607_v18 = vpack.i.bf16 %v2052_v52, %v2046_v11 }
 0x3ea   :  { %1608 = vrot.lane.b32.xlu0 %v1607_v18, %s1671_s22 }
 0x3eb   :  { %v740_v21 = vpop.f32.mrf.mxu0  ;;  %941 = vmatpush.bf16.msrb.mxu2 %v1504_v38 }
 0x3ec   :  { %v741_v22 = vadd.f32 %v740_v21, %v696_v2 }
 0x3ee   :  { %v2064_v24 = vadd.f32 %v741_v22, %v1930_v4 }
 0x3f0   :  { %v1612_v63 = vpack.i.bf16 %v2064_v24, %v2052_v52 }
 0x3f2   :  { %1613 = vrot.lane.b32.xlu1 %v1612_v63, %s1672_s0 }
 0x3f3   :  { %v742_v28 = vpop.f32.mrf.mxu0 }
 0x3f4   :  { %v743_v29 = vadd.f32 %v742_v28, %v696_v2 }
 0x3f6   :  { %v2076_v4 = vadd.f32 %v743_v29, %v1942_v10 }
 0x3f8   :  { %v1617_v6 = vpack.i.bf16 %v2076_v4, %v2064_v24 }
 0x3fa   :  { %1618 = vrot.lane.b32.xlu2 %v1617_v6, %s1671_s22 }
 0x3fb   :  { %v745_v49 = vpop.f32.mrf.mxu0 }
 0x3fc   :  { %v746_v31 = vadd.f32 %v745_v49, %v696_v2 }
 0x3fe   :  { %v2082_v47 = vadd.f32 %v746_v31, %v1949_v17  ;;  %v1503_v17 = vld [vmem:[%s2363_s3 + $0x68] sm:$0xff] }
 0x3ff   :  { %942 = vmatpush.bf16.msrb.mxu2 %v1503_v17 }
 0x400   :  { %v1622_v32 = vpack.i.bf16 %v2082_v47, %v2076_v4 }
 0x402   :  { %1623 = vrot.lane.b32.xlu0 %v1622_v32, %s1672_s0  ;;  %v887_v32 = vperm.slane %v1882_v5, 2  ;;  %v1511_v5 = vld [vmem:[%s2367_s7 + $0x8] sm:$0xff] }
 0x403   :  { %v747_v33 = vpop.f32.mrf.mxu0  ;;  %943 = vmatpush.bf16.msrb.mxu2 %v1502_v37  ;;  %1086 = vmatpush.bf16.msrb.mxu3 %v1511_v5 }
 0x404   :  { %v748_v34 = vadd.f32 %v747_v33, %v696_v2 }
 0x406   :  { %v2088_v10 = vadd.f32 %v748_v34, %v1964_v42 }
 0x408   :  { %v1632_v35 = vpack.i.bf16 0.0, %v2088_v10  ;;  %v1627_v36 = vpack.i.bf16 %v2088_v10, %v2082_v47 }
 0x40a   :  { %1633 = vrot.lane.b32.xlu2 %v1632_v35, %s1672_s0  ;;  %1628 = vrot.lane.b32.xlu1 %v1627_v36, %s1671_s22 }
 0x43c   :  { %v1604_v42 = vpop.permute.xlu2 %1603 }
 0x43d   :  { %v1606_v40 = vunpack.i.h.bf16 %v1604_v42  ;;  %v1605_v41 = vunpack.i.l.bf16 %v1604_v42 }
 0x44c   :  { %v1599_v39 = vpop.permute.xlu1 %1598 }
 0x44d   :  { %v1601_v27 = vunpack.i.h.bf16 %v1599_v39  ;;  %v1600_v20 = vunpack.i.l.bf16 %v1599_v39 }
 0x44f   :  { %v855_v44 = vsel %vm264_vm6, %v2037_v26, %v1601_v27  ;;  %v854_v45 = vsel %vm264_vm6, 0.0, %v1600_v20 }
 0x450   :  { %v863_v46 = vsel %vm273_vm7, %v855_v44, %v1606_v40  ;;  %v862_v48 = vsel %vm273_vm7, %v854_v45, %v1605_v41 }
 0x451   :  { %v870_v50 = vpack.c.bf16 %v863_v46, %v862_v48  ;;  %v1510_v46 = vld [vmem:[%s2367_s7] sm:$0xff] }
 0x452   :  { %1087 = vmatpush.bf16.msrb.mxu3 %v1510_v46 }
 0x453   :  { %1449 = vmatmul.msk.bf16.vlgmr.msrb.gmra.mxu2 %vm335_vm8, %v870_v50 }
 0x454   :  { %v1619_v2 = vpop.permute.xlu2 %1618 }
 0x455   :  { %v1621_v13 = vunpack.i.h.bf16 %v1619_v2  ;;  %v1620_v3 = vunpack.i.l.bf16 %v1619_v2 }
 0x457   :  { %v859_v30 = vsel %vm264_vm6, %v2064_v24, %v1621_v13  ;;  %v858_v14 = vsel %vm264_vm6, %v2052_v52, %v1620_v3 }
 0x45c   :  { %v1609_v53 = vpop.permute.xlu0 %1608 }
 0x45d   :  { %v1611_v54 = vunpack.i.h.bf16 %v1609_v53  ;;  %v1610_v55 = vunpack.i.l.bf16 %v1609_v53 }
 0x45f   :  { %v857_v58 = vsel %vm264_vm6, %v2046_v11, %v1611_v54  ;;  %v856_v60 = vsel %vm264_vm6, %v2040_v7, %v1610_v55 }
 0x464   :  { %v1614_v16 = vpop.permute.xlu1 %1613  ;;  %v1634_v23 = vpop.permute.xlu2 %1633 }
 0x465   :  { %v1616_v56 = vunpack.i.h.bf16 %v1614_v16  ;;  %v1615_v12 = vunpack.i.l.bf16 %v1614_v16  ;;  %v1636_v28 = vunpack.i.h.bf16 %v1634_v23  ;;  %v1635_v29 = vunpack.i.l.bf16 %v1634_v23 }
 0x467   :  { %v864_v62 = vsel %vm273_vm7, %v856_v60, %v1615_v12  ;;  %v865_v19 = vsel %vm273_vm7, %v857_v58, %v1616_v56 }
 0x468   :  { %v871_v59 = vpack.c.bf16 %v865_v19, %v864_v62 }
 0x46a   :  { %1450 = vmatmul.msk.bf16.gmra.mxu2 %vm335_vm8, %v871_v59 }
 0x474   :  { %v1624_v61 = vpop.permute.xlu0 %1623 }
 0x475   :  { %v1626_v8 = vunpack.i.h.bf16 %v1624_v61  ;;  %v1625_v9 = vunpack.i.l.bf16 %v1624_v61 }
 0x477   :  { %v866_v51 = vsel %vm273_vm7, %v858_v14, %v1625_v9  ;;  %v867_v15 = vsel %vm273_vm7, %v859_v30, %v1626_v8 }
 0x478   :  { %v872_v18 = vpack.c.bf16 %v867_v15, %v866_v51 }
 0x47a   :  { %1451 = vmatmul.msk.bf16.gmra.mxu2 %vm335_vm8, %v872_v18 }
 0x47c   :  { %v1629_v57 = vpop.permute.xlu1 %1628 }
 0x47d   :  { %v1631_v21 = vunpack.i.h.bf16 %v1629_v57  ;;  %v1630_v22 = vunpack.i.l.bf16 %v1629_v57 }
 0x47f   :  { %v861_v63 = vsel %vm264_vm6, %v2082_v47, %v1631_v21  ;;  %v860_v25 = vsel %vm264_vm6, %v2076_v4, %v1630_v22 }
 0x480   :  { %v868_v38 = vsel %vm273_vm7, %v860_v25, %v1635_v29  ;;  %v869_v6 = vsel %vm273_vm7, %v861_v63, %v1636_v28 }
 0x481   :  { %v873_v49 = vpack.c.bf16 %v869_v6, %v868_v38 }
 0x48a   :  { %1452 = vmatmul.msk.bf16.gmra.mxu2 %vm335_vm8, %v873_v49 }
 0x4d6   :  { %v945_v31 = vpop.f32.mrf.mxu2 }
 0x4d7   :  { %v946_v33 = vadd.f32 %v945_v31, %v887_v32 }
 0x4d9   :  { %v965_v36 = vmax.f32 %v946_v33, 0.0 }
 0x4de   :  { %v947_v34 = vpop.f32.mrf.mxu2 }
 0x4df   :  { %v948_v35 = vadd.f32 %v947_v34, %v887_v32 }
 0x4e1   :  { %v966_v17 = vmax.f32 %v948_v35, 0.0 }
 0x4e3   :  { %v973_v37 = vpack.c.bf16 %v966_v17, %v965_v36 }
 0x4e5   :  { %1465 = vmatmul.msk.bf16.vlgmr.msrb.gmra.mxu1 %vm264_vm6, %v973_v37 }
 0x4ed   :  { %v950_v42 = vpop.f32.mrf.mxu2 }
 0x4ee   :  { %v951_v39 = vadd.f32 %v950_v42, %v887_v32 }
 0x4f0   :  { %v967_v40 = vmax.f32 %v951_v39, 0.0 }
 0x4f5   :  { %v952_v27 = vpop.f32.mrf.mxu2 }
 0x4f6   :  { %v953_v20 = vadd.f32 %v952_v27, %v887_v32 }
 0x4f8   :  { %v968_v41 = vmax.f32 %v953_v20, 0.0 }
 0x4fa   :  { %v974_v44 = vpack.c.bf16 %v968_v41, %v967_v40 }
 0x4fc   :  { %1466 = vmatmul.msk.bf16.gmra.mxu1 %vm264_vm6, %v974_v44 }
 0x4fd   :  { %v955_v45 = vpop.f32.mrf.mxu2 }
 0x4fe   :  { %v956_v48 = vadd.f32 %v955_v45, %v887_v32 }
 0x500   :  { %v969_v54 = vmax.f32 %v956_v48, 0.0 }
 0x505   :  { %v957_v50 = vpop.f32.mrf.mxu2 }
 0x506   :  { %v958_v53 = vadd.f32 %v957_v50, %v887_v32 }
 0x508   :  { %v970_v55 = vmax.f32 %v958_v53, 0.0 }
 0x50a   :  { %v975_v16 = vpack.c.bf16 %v970_v55, %v969_v54 }
 0x50c   :  { %1467 = vmatmul.msk.bf16.gmra.mxu1 %vm264_vm6, %v975_v16 }
 0x50d   :  { %v960_v56 = vpop.f32.mrf.mxu2 }
 0x50e   :  { %v961_v12 = vadd.f32 %v960_v56, %v887_v32 }
 0x510   :  { %v971_v62 = vmax.f32 %v961_v12, 0.0 }
 0x515   :  { %v962_v58 = vpop.f32.mrf.mxu2 }
 0x516   :  { %v963_v60 = vadd.f32 %v962_v58, %v887_v32 }
 0x518   :  { %v972_v19 = vmax.f32 %v963_v60, 0.0 }
 0x51a   :  { %v976_v59 = vpack.c.bf16 %v972_v19, %v971_v62 }
 0x51c   :  { %1468 = vmatmul.msk.bf16.gmra.mxu1 %vm264_vm6, %v976_v59 }
 0x562   :  { %v1016_v0 = vpop.f32.mrf.mxu1 }
 0x563   :  { %v1017_v2 = vadd.f32 %v1016_v0, %v982_v1 }
 0x565   :  { %v1036_v61 = vadd.f32 %v1017_v2, %v2037_v26 }
 0x56a   :  { %v1018_v13 = vpop.f32.mrf.mxu1 }
 0x56b   :  { %v1019_v3 = vadd.f32 %v1018_v13, %v982_v1 }
 0x56d   :  { %v1037_v8 = vadd.f32 %v1019_v3, %v2040_v7 }
 0x56f   :  { %v1044_v9 = vpack.c.bf16 %v1037_v8, %v1036_v61 }
 0x571   :  { %1477 = vmatmul.msk.bf16.vlgmr.msrb.gmra.mxu3 %vm264_vm6, %v1044_v9 }
 0x579   :  { %v1021_v30 = vpop.f32.mrf.mxu1 }
 0x57a   :  { %v1022_v14 = vadd.f32 %v1021_v30, %v982_v1 }
 0x57c   :  { %v1038_v18 = vadd.f32 %v1022_v14, %v2046_v11 }
 0x581   :  { %v1023_v51 = vpop.f32.mrf.mxu1 }
 0x582   :  { %v1024_v15 = vadd.f32 %v1023_v51, %v982_v1 }
 0x584   :  { %v1039_v57 = vadd.f32 %v1024_v15, %v2052_v52 }
 0x586   :  { %v1045_v21 = vpack.c.bf16 %v1039_v57, %v1038_v18 }
 0x588   :  { %1478 = vmatmul.msk.bf16.gmra.mxu3 %vm264_vm6, %v1045_v21 }
 0x589   :  { %v1026_v43 = vpop.f32.mrf.mxu1 }
 0x58a   :  { %v1027_v22 = vadd.f32 %v1026_v43, %v982_v1 }
 0x58c   :  { %v1040_v7 = vadd.f32 %v1027_v22, %v2064_v24  ;;  %v1638_v24 = vld [vmem:[%s2368_s8] ss:$0 sm:$0xff] }
 0x591   :  { %v1028_v23 = vpop.f32.mrf.mxu1 }
 0x592   :  { %v1029_v26 = vadd.f32 %v1028_v23, %v982_v1 }
 0x594   :  { %v1041_v63 = vadd.f32 %v1029_v26, %v2076_v4 }
 0x596   :  { %v1046_v25 = vpack.c.bf16 %v1041_v63, %v1040_v7 }
 0x598   :  { %1479 = vmatmul.msk.bf16.gmra.mxu3 %vm264_vm6, %v1046_v25 }
 0x599   :  { %v1031_v28 = vpop.f32.mrf.mxu1 }
 0x59a   :  { %v1032_v29 = vadd.f32 %v1031_v28, %v982_v1 }
 0x59c   :  { %v1042_v52 = vadd.f32 %v1032_v29, %v2082_v47 }
 0x5a1   :  { %v1033_v38 = vpop.f32.mrf.mxu1 }
 0x5a2   :  { %v1034_v11 = vadd.f32 %v1033_v38, %v982_v1 }
 0x5a4   :  { %v1043_v6 = vadd.f32 %v1034_v11, %v2088_v10 }
 0x5a6   :  { %v1047_v49 = vpack.c.bf16 %v1043_v6, %v1042_v52 }
 0x5a8   :  { %1480 = vmatmul.msk.bf16.gmra.mxu3 %vm264_vm6, %v1047_v49 }
 0x5f4   :  { %v1089_v31 = vpop.f32.mrf.mxu3 }
 0x5f5   :  { %v1090_v4 = vadd.f32 %v1638_v24, %v1089_v31 }
 0x5f7   :  { %1232 = vst.msk [vmem:[%s2369_s9] sm:$0xff] %vm1231_vm12, %v1090_v4  ;;  %1256 = vrot.lane.b32.xlu0 %v1090_v4, %s1673_s29  ;;  %v1110_v42 = vsel %vm1109_vm13, %v1090_v4, -inf }
 0x5fc   :  { %v1091_v47 = vpop.f32.mrf.mxu3 }
 0x5fd   :  { %v1092_v10 = vadd.f32 %v1638_v24, %v1091_v47 }
 0x5ff   :  { %1233 = vst.msk [vmem:[%s2369_s9 + $0x8] sm:$0xff] %vm1231_vm12, %v1092_v10  ;;  %1258 = vrot.lane.b32.xlu2 %v1092_v10, %s1673_s29  ;;  %v1113_v32 = vsel %vm1109_vm13, %v1092_v10, -inf }
 0x600   :  { %1114 = vmax.xlane.f32.xlu1 %v1113_v32 }
 0x60b   :  { %v1094_v33 = vpop.f32.mrf.mxu3 }
 0x60c   :  { %v1095_v34 = vadd.f32 %v1638_v24, %v1094_v33 }
 0x60e   :  { %1234 = vst.msk [vmem:[%s2369_s9 + $0x10] sm:$0xff] %vm1231_vm12, %v1095_v34  ;;  %v1116_v20 = vsel %vm1109_vm13, %v1095_v34, -inf }
 0x613   :  { %v1096_v35 = vpop.f32.mrf.mxu3 }
 0x614   :  { %v1097_v36 = vadd.f32 %v1638_v24, %v1096_v35 }
 0x616   :  { %1235 = vst.msk [vmem:[%s2369_s9 + $0x18] sm:$0xff] %vm1231_vm12, %v1097_v36  ;;  %v1119_v44 = vsel %vm1109_vm13, %v1097_v36, -inf }
 0x619   :  { %1260 = vrot.lane.b32.xlu1 %v1095_v34, %s1673_s29 }
 0x61b   :  { %v1099_v17 = vpop.f32.mrf.mxu3 }
 0x61c   :  { %v2181_v37 = vadd.f32 %v1638_v24, %v1099_v17 }
 0x61e   :  { %1236 = vst.msk [vmem:[%s2369_s9 + $0x20] sm:$0xff] %vm1231_vm12, %v2181_v37  ;;  %v1122_v48 = vsel %vm1109_vm13, %v2181_v37, -inf }
 0x621   :  { %1111 = vmax.xlane.f32.xlu0 %v1110_v42 }
 0x623   :  { %v1101_v39 = vpop.f32.mrf.mxu3 }
 0x624   :  { %v2189_v27 = vadd.f32 %v1638_v24, %v1101_v39 }
 0x626   :  { %1237 = vst.msk [vmem:[%s2369_s9 + $0x28] sm:$0xff] %vm1231_vm12, %v2189_v27  ;;  %v1125_v46 = vsel %vm1109_vm13, %v2189_v27, -inf }
 0x628   :  { %1117 = vmax.xlane.f32.xlu2 %v1116_v20 }
 0x62b   :  { %v1104_v40 = vpop.f32.mrf.mxu3 }
 0x62c   :  { %v2197_v41 = vadd.f32 %v1638_v24, %v1104_v40 }
 0x62e   :  { %1238 = vst.msk [vmem:[%s2369_s9 + $0x30] sm:$0xff] %vm1231_vm12, %v2197_v41  ;;  %v1128_v53 = vsel %vm1109_vm13, %v2197_v41, -inf }
 0x630   :  { %1120 = vmax.xlane.f32.xlu2 %v1119_v44 }
 0x633   :  { %v1106_v5 = vpop.f32.mrf.mxu3 }
 0x634   :  { %v2205_v45 = vadd.f32 %v1638_v24, %v1106_v5 }
 0x635   :  { %1262 = vrot.lane.b32.xlu0 %v1097_v36, %s1673_s29 }
 0x636   :  { %1239 = vst.msk [vmem:[%s2369_s9 + $0x38] sm:$0xff] %vm1231_vm12, %v2205_v45  ;;  %v1131_v50 = vsel %vm1109_vm13, %v2205_v45, -inf }
 0x643   :  { %1126 = vmax.xlane.f32.xlu1 %v1125_v46 }
 0x648   :  { %1264 = vrot.lane.b32.xlu2 %v2181_v37, %s1673_s29 }
 0x659   :  { %v2229_v58 = vpop.permute.xlu2 %1258 }
 0x65f   :  { %1123 = vmax.xlane.f32.xlu0 %v1122_v48 }
 0x667   :  { %1132 = vmax.xlane.f32.xlu0 %v1131_v50 }
 0x669   :  { %v2227_v12 = vpop.permute.xlu0 %1256 }
 0x671   :  { %1129 = vmax.xlane.f32.xlu2 %v1128_v53 }
 0x673   :  { %v1115_v54 = vpop.xlane.xlu1 %1114 }
 0x674   :  { %v1135_v55 = vsub.f32 %v1092_v10, %v1115_v54 }
 0x676   :  { %v1144_v16 = vmul.f32 1.442695, %v1135_v55 }
 0x678   :  { %1639 = vpow2.f32 %v1144_v16 }
 0x67e   :  { %v2223_v56 = vpop.eup %1639 }
 0x689   :  { %1168 = vrot.lane.b32.xlu2 %v2223_v56, %s1674_s20 }
 0x68b   :  { %v2241_v30 = vpop.permute.xlu1 %1260 }
 0x694   :  { %v1112_v60 = vpop.xlane.xlu0 %1111 }
 0x695   :  { %v1134_v62 = vsub.f32 %v1090_v4, %v1112_v60 }
 0x697   :  { %v1142_v19 = vmul.f32 1.442695, %v1134_v62 }
 0x699   :  { %1641 = vpow2.f32 %v1142_v19 }
 0x69b   :  { %v1118_v59 = vpop.xlane.xlu2 %1117 }
 0x69c   :  { %v1136_v0 = vsub.f32 %v1095_v34, %v1118_v59 }
 0x69e   :  { %v1146_v1 = vmul.f32 1.442695, %v1136_v0 }
 0x69f   :  { %v2231_v2 = vpop.eup %1641 }
 0x6a0   :  { %1643 = vpow2.f32 %v1146_v1  ;;  %1166 = vrot.lane.b32.xlu1 %v2231_v2, %s1674_s20 }
 0x6a3   :  { %v1121_v13 = vpop.xlane.xlu2 %1120 }
 0x6a4   :  { %v1137_v3 = vsub.f32 %v1097_v36, %v1121_v13 }
 0x6a6   :  { %v2235_v61 = vpop.eup %1643  ;;  %v1148_v8 = vmul.f32 1.442695, %v1137_v3 }
 0x6a7   :  { %1170 = vrot.lane.b32.xlu0 %v2235_v61, %s1674_s20  ;;  %v2250_v57 = vpop.permute.xlu0 %1262 }
 0x6a8   :  { %1645 = vpow2.f32 %v1148_v8 }
 0x6ab   :  { %v2254_v7 = vpop.permute.xlu2 %1264 }
 0x6ae   :  { %v2239_v9 = vpop.eup %1645 }
 0x6af   :  { %1172 = vrot.lane.b32.xlu1 %v2239_v9, %s1674_s20 }
 0x6b6   :  { %v1127_v14 = vpop.xlane.xlu1 %1126 }
 0x6b7   :  { %v1139_v51 = vsub.f32 %v2189_v27, %v1127_v14 }
 0x6b9   :  { %v1152_v15 = vmul.f32 1.442695, %v1139_v51 }
 0x6bb   :  { %1647 = vpow2.f32 %v1152_v15 }
 0x6c1   :  { %v2246_v18 = vpop.eup %1647 }
 0x6c2   :  { %1176 = vrot.lane.b32.xlu2 %v2246_v18, %s1674_s20 }
 0x6d2   :  { %v1124_v21 = vpop.xlane.xlu0 %1123 }
 0x6d3   :  { %v1138_v43 = vsub.f32 %v2181_v37, %v1124_v21 }
 0x6d5   :  { %v1150_v22 = vmul.f32 1.442695, %v1138_v43 }
 0x6d7   :  { %1649 = vpow2.f32 %v1150_v22 }
 0x6da   :  { %v1133_v23 = vpop.xlane.xlu0 %1132 }
 0x6db   :  { %v1141_v26 = vsub.f32 %v2205_v45, %v1133_v23 }
 0x6dd   :  { %v2256_v63 = vpop.eup %1649  ;;  %v1156_v25 = vmul.f32 1.442695, %v1141_v26 }
 0x6de   :  { %1174 = vrot.lane.b32.xlu0 %v2256_v63, %s1674_s20 }
 0x6df   :  { %1651 = vpow2.f32 %v1156_v25 }
 0x6e4   :  { %v1130_v28 = vpop.xlane.xlu2 %1129 }
 0x6e5   :  { %v2260_v29 = vpop.eup %1651  ;;  %v1140_v38 = vsub.f32 %v2197_v41, %v1130_v28 }
 0x6e6   :  { %1180 = vrot.lane.b32.xlu0 %v2260_v29, %s1674_s20 }
 0x6e7   :  { %v1154_v11 = vmul.f32 1.442695, %v1140_v38 }
 0x6e9   :  { %1653 = vpow2.f32 %v1154_v11 }
 0x6ec   :  { %v1169_v24 = vpop.permute.xlu2 %1168 }
 0x6ed   :  { %v1194_v4 = vsel %vm1190_vm14, %v1169_v24, 0.0 }
 0x6ef   :  { %v2265_v52 = vpop.eup %1653 }
 0x6f0   :  { %1178 = vrot.lane.b32.xlu1 %v2265_v52, %s1674_s20 }
 0x712   :  { %v1167_v6 = vpop.permute.xlu1 %1166 }
 0x713   :  { %v1191_v49 = vsel %vm1190_vm14, %v1167_v6, 0.0 }
 0x714   :  { %1192 = vadd.xlane.f32.xlu2 %v1191_v49 }
 0x719   :  { %v1171_v31 = vpop.permute.xlu0 %1170 }
 0x71a   :  { %1195 = vadd.xlane.f32.xlu1 %v1194_v4  ;;  %v1197_v47 = vsel %vm1190_vm14, %v1171_v31, 0.0 }
 0x71b   :  { %1198 = vadd.xlane.f32.xlu0 %v1197_v47 }
 0x71c   :  { %v1177_v10 = vpop.permute.xlu2 %1176 }
 0x71d   :  { %v1206_v34 = vsel %vm1190_vm14, %v1177_v10, 0.0 }
 0x721   :  { %v1173_v32 = vpop.permute.xlu1 %1172 }
 0x722   :  { %v1200_v33 = vsel %vm1190_vm14, %v1173_v32, 0.0 }
 0x723   :  { %1201 = vadd.xlane.f32.xlu2 %v1200_v33  ;;  %1207 = vadd.xlane.f32.xlu0 %v1206_v34 }
 0x737   :  { %1266 = vrot.lane.b32.xlu0 %v2189_v27, %s1673_s29 }
 0x750   :  { %v1175_v35 = vpop.permute.xlu0 %1174 }
 0x751   :  { %v1203_v36 = vsel %vm1190_vm14, %v1175_v35, 0.0 }
 0x752   :  { %1204 = vadd.xlane.f32.xlu1 %v1203_v36 }
 0x758   :  { %v1181_v17 = vpop.permute.xlu0 %1180 }
 0x759   :  { %v1212_v37 = vsel %vm1190_vm14, %v1181_v17, 0.0 }
 0x75a   :  { %1213 = vadd.xlane.f32.xlu1 %v1212_v37 }
 0x762   :  { %v1179_v42 = vpop.permute.xlu1 %1178 }
 0x763   :  { %v1209_v39 = vsel %vm1190_vm14, %v1179_v42, 0.0 }
 0x764   :  { %1210 = vadd.xlane.f32.xlu2 %v1209_v39 }
 0x773   :  { %1268 = vrot.lane.b32.xlu1 %v2197_v41, %s1673_s29 }
 0x77c   :  { %1270 = vrot.lane.b32.xlu2 %v2205_v45, %s1673_s29 }
 0x787   :  { %v1193_v20 = vpop.xlane.xlu2 %1192 }
 0x788   :  { %1655 = vrcp.f32 %v1193_v20 }
 0x78d   :  { %v1196_v27 = vpop.xlane.xlu1 %1195 }
 0x78e   :  { %v1656_v40 = vpop.eup %1655  ;;  %1657 = vrcp.f32 %v1196_v27  ;;  %v1199_v44 = vpop.xlane.xlu0 %1198 }
 0x78f   :  { %v1223_v5 = vmul.f32 %v1656_v40, %v2231_v2  ;;  %1659 = vrcp.f32 %v1199_v44 }
 0x791   :  { %1240 = vst.msk [vmem:[%s2369_s9] sm:$0xff] %vm1109_vm13, %v1223_v5 }
 0x792   :  { %1281 = vst.msk [vmem:[%s2369_s9] sm:$0xff] %vm1280_vm15, %v2227_v12 }
 0x794   :  { %v1658_v41 = vpop.eup %1657 }
 0x795   :  { %v1660_v45 = vpop.eup %1659  ;;  %v1224_v46 = vmul.f32 %v1658_v41, %v2223_v56 }
 0x796   :  { %v1225_v48 = vmul.f32 %v1660_v45, %v2235_v61  ;;  %v1202_v50 = vpop.xlane.xlu2 %1201  ;;  %v1208_v53 = vpop.xlane.xlu0 %1207 }
 0x797   :  { %1241 = vst.msk [vmem:[%s2369_s9 + $0x8] sm:$0xff] %vm1109_vm13, %v1224_v46  ;;  %1661 = vrcp.f32 %v1202_v50 }
 0x798   :  { %1282 = vst.msk [vmem:[%s2369_s9 + $0x8] sm:$0xff] %vm1280_vm15, %v2229_v58  ;;  %1663 = vrcp.f32 %v1208_v53 }
 0x799   :  { %1242 = vst.msk [vmem:[%s2369_s9 + $0x10] sm:$0xff] %vm1109_vm13, %v1225_v48 }
 0x79a   :  { %1283 = vst.msk [vmem:[%s2369_s9 + $0x10] sm:$0xff] %vm1280_vm15, %v2241_v30 }
 0x79d   :  { %v1662_v54 = vpop.eup %1661 }
 0x79e   :  { %v1664_v55 = vpop.eup %1663  ;;  %v1226_v16 = vmul.f32 %v1662_v54, %v2239_v9 }
 0x79f   :  { %v1228_v56 = vmul.f32 %v1664_v55, %v2246_v18 }
 0x7a0   :  { %1243 = vst.msk [vmem:[%s2369_s9 + $0x18] sm:$0xff] %vm1109_vm13, %v1226_v16 }
 0x7a1   :  { %1284 = vst.msk [vmem:[%s2369_s9 + $0x18] sm:$0xff] %vm1280_vm15, %v2250_v57 }
 0x7a2   :  { %1245 = vst.msk [vmem:[%s2369_s9 + $0x28] sm:$0xff] %vm1109_vm13, %v1228_v56 }
 0x7a9   :  { %v1267_v12 = vpop.permute.xlu0 %1266 }
 0x7aa   :  { %1286 = vst.msk [vmem:[%s2369_s9 + $0x28] sm:$0xff] %vm1280_vm15, %v1267_v12 }
 0x7c5   :  { %v1205_v58 = vpop.xlane.xlu1 %1204 }
 0x7c6   :  { %1665 = vrcp.f32 %v1205_v58 }
 0x7cc   :  { %v1666_v60 = vpop.eup %1665 }
 0x7cd   :  { %v1227_v62 = vmul.f32 %v1666_v60, %v2256_v63  ;;  %v1214_v19 = vpop.xlane.xlu1 %1213 }
 0x7ce   :  { %1667 = vrcp.f32 %v1214_v19 }
 0x7cf   :  { %1244 = vst.msk [vmem:[%s2369_s9 + $0x20] sm:$0xff] %vm1109_vm13, %v1227_v62 }
 0x7d0   :  { %1285 = vst.msk [vmem:[%s2369_s9 + $0x20] sm:$0xff] %vm1280_vm15, %v2254_v7 }
 0x7d4   :  { %v1668_v59 = vpop.eup %1667 }
 0x7d5   :  { %v1230_v0 = vmul.f32 %v1668_v59, %v2260_v29 }
 0x7d7   :  { %1247 = vst.msk [vmem:[%s2369_s9 + $0x38] sm:$0xff] %vm1109_vm13, %v1230_v0  ;;  %v1211_v1 = vpop.xlane.xlu2 %1210 }
 0x7d8   :  { %1669 = vrcp.f32 %v1211_v1 }
 0x7de   :  { %v1670_v2 = vpop.eup %1669 }
 0x7df   :  { %v1229_v13 = vmul.f32 %v1670_v2, %v2265_v52  ;;  %v1271_v3 = vpop.permute.xlu2 %1270 }
 0x7e0   :  { %1288 = vst.msk [vmem:[%s2369_s9 + $0x38] sm:$0xff] %vm1280_vm15, %v1271_v3 }
 0x7e1   :  { %1246 = vst.msk [vmem:[%s2369_s9 + $0x30] sm:$0xff] %vm1109_vm13, %v1229_v13 }
 0x7e5   :  { %v1269_v61 = vpop.permute.xlu1 %1268 }
 0x7e6   :  { %1287 = vst.msk [vmem:[%s2369_s9 + $0x30] sm:$0xff] %vm1280_vm15, %v1269_v61 }

</bundles_post_ra>
